<compile_context>
chip_gen: v6e
topology: v6e:2x2x1
jax: 0.10.0
libtpu: 0.0.40
codegen_flags: <defaults>
</compile_context>

<pallas_src>
import functools

import jax
import jax.numpy as jnp
from jax import lax
from jax.experimental import pallas as pl
from jax.experimental.pallas import tpu as pltpu

_NEG = -1e30          # "minus infinity" mask value (plain Python float, never a const)
_EPS2 = 1e-24         # (torch F.normalize eps = 1e-12) ** 2


def _reduce_all(x, op):
    """Reduce a 2-D value over both axes, keeping a (1, 1) shape (lane then sublane)."""
    return op(op(x, axis=1, keepdims=True), axis=0, keepdims=True)


def _cos_topk_kernel(cb_ref, a_ref, w_ref, idx_ref, cos_ref,
                     *, top_k: int, n_valid: int, precision):
    j = pl.program_id(0)
    last_j = pl.num_programs(0) - 1
    tile_n, d_pad = cb_ref.shape
    kw = w_ref.shape[1]
    contract_d = (((1,), (1,)), ((), ()))           # contract on D (a @ cb.T style)

    # ---- streaming pass: cosine of the anchor vs every row of this tile --------
    cb = cb_ref[...]                                # (tile_n, d_pad), native dtype
    a = a_ref[...]                                  # (1, d_pad),      native dtype
    dots = lax.dot_general(a, cb, contract_d,
                           preferred_element_type=jnp.float32,
                           precision=precision)                       # (1, tile_n)
    ones_row = jnp.ones((1, d_pad), cb.dtype)
    ssq = lax.dot_general(ones_row, cb * cb, contract_d,
                          preferred_element_type=jnp.float32,
                          precision=precision)                        # (1, tile_n)
    cos = dots * lax.rsqrt(jnp.maximum(ssq, _EPS2))   # anchor 1/||a|| applied later
    gidx_tile = j * tile_n + lax.broadcasted_iota(jnp.int32, (1, tile_n), 1)
    cos = jnp.where(gidx_tile < n_valid, cos, _NEG)   # padded rows never selected
    # Row-j update of the persistent cosine table via a select (static indexing only;
    # table traffic is tiny compared with the streamed tile).
    tbl_row = lax.broadcasted_iota(jnp.int32, cos_ref.shape, 0)
    cos_ref[...] = jnp.where(tbl_row == j, cos, cos_ref[...])

    # ---- finalize on the last tile: exact top-k + softmax weights --------------
    @pl.when(j == last_j)
    def _finalize():
        table = cos_ref[...]                                    # (n_tiles, tile_n) f32
        row_i = lax.broadcasted_iota(jnp.int32, table.shape, 0)
        lane_i = lax.broadcasted_iota(jnp.int32, table.shape, 1)
        gidx = row_i * tile_n + lane_i

        # Exact top-k: one element removed per peel step (first-index tie-break,
        # matching torch.topk even with duplicated cosine values).
        vals = table
        sel_val, sel_idx = [], []
        for _ in range(top_k):                                  # static unroll
            mx = _reduce_all(vals, jnp.max)                                   # (1, 1)
            idx = _reduce_all(jnp.where(vals == mx, gidx, 2147483647), jnp.min)  # (1,1)
            sel_val.append(mx)
            sel_idx.append(idx)
            vals = jnp.where(gidx == idx, _NEG, vals)

        # softmax(cos / 0.1) over the k winners.  1/||a|| is row-independent, so it
        # is computed exactly once here instead of once per streamed tile.
        a32 = a.astype(jnp.float32)
        inv_a = lax.rsqrt(jnp.maximum(jnp.sum(a32 * a32, axis=1, keepdims=True),
                                      _EPS2))                   # (1, 1)
        lane_k = lax.broadcasted_iota(jnp.int32, (1, kw), 1)
        valvec = jnp.full((1, kw), _NEG, jnp.float32)
        idxvec = jnp.zeros((1, kw), jnp.int32)
        for kk in range(top_k):
            valvec = jnp.where(lane_k == kk, sel_val[kk], valvec)
            idxvec = jnp.where(lane_k == kk, sel_idx[kk], idxvec)
        logits = (valvec - sel_val[0]) * (inv_a * 10.0)         # temperature 0.1
        e = jnp.where(lane_k < top_k, jnp.exp(logits), 0.0)
        w_ref[...] = e / jnp.sum(e, axis=1, keepdims=True)      # exact 0 outside top-k
        idx_ref[...] = idxvec


def _round_up(x: int, m: int) -> int:
    return (x + m - 1) // m * m


def softmax_attention(codebook, anchor_noise, top_k: int, *,
                      precision=lax.Precision.DEFAULT,
                      target_tile_bytes: int = 8 * 1024 * 1024):
    """codebook: (N, C, H, W), anchor_noise: (1, C, H, W) -> (1, C, H, W)."""
    n = int(codebook.shape[0])
    chw = tuple(int(s) for s in codebook.shape[1:])
    d = 1
    for s in chw:
        d *= s
    top_k = int(top_k)
    assert top_k >= 1

    d_pad = _round_up(d, 128)
    kw = _round_up(top_k, 128)
    itemsize = jnp.dtype(codebook.dtype).itemsize

    # Large streamed tiles (~8 MiB) amortize the ~0.35 us per-grid-step overhead;
    # the pipeline double-buffers the tile and the cb*cb MXU operand adds ~1 more.
    tile_n = max(8, (target_tile_bytes // (d_pad * itemsize)) // 8 * 8)
    tile_n = min(tile_n, _round_up(n, 8))
    n_tiles = -(-n // tile_n)
    n_pad = n_tiles * tile_n

    cb_flat = codebook.reshape(n, d)            # native dtype; no wrapper cast
    a_flat = anchor_noise.reshape(1, d)
    if n_pad != n or d_pad != d:
        cb_flat = jnp.pad(cb_flat, ((0, n_pad - n), (0, d_pad - d)))
    if d_pad != d:
        a_flat = jnp.pad(a_flat, ((0, 0), (0, d_pad - d)))

    tile_bytes = tile_n * d_pad * itemsize
    vmem_limit = int(3 * tile_bytes + n_tiles * tile_n * 4 + 4 * d_pad * 4
                     + 4 * 1024 * 1024)
    vmem_limit = min(max(vmem_limit, 16 * 1024 * 1024), 96 * 1024 * 1024)

    kernel = functools.partial(_cos_topk_kernel, top_k=top_k, n_valid=n,
                               precision=precision)

    w_pad, idx_pad = pl.pallas_call(
        kernel,
        out_shape=(jax.ShapeDtypeStruct((1, kw), jnp.float32),   # softmax weights
                   jax.ShapeDtypeStruct((1, kw), jnp.int32)),    # winner row indices
        grid_spec=pltpu.PrefetchScalarGridSpec(
            num_scalar_prefetch=0,
            grid=(n_tiles,),
            in_specs=[
                pl.BlockSpec((tile_n, d_pad), lambda j: (j, 0)),   # streamed codebook
                pl.BlockSpec((1, d_pad), lambda j: (0, 0)),        # resident anchor
            ],
            out_specs=[
                pl.BlockSpec((1, kw), lambda j: (0, 0)),
                pl.BlockSpec((1, kw), lambda j: (0, 0)),
            ],
            scratch_shapes=[
                pltpu.VMEM((n_tiles, tile_n), jnp.float32),        # cosine table
            ],
        ),
        compiler_params=pltpu.CompilerParams(
            # The tile axis must run sequentially on one core: every step appends to
            # the cosine table and the last step consumes all of it.
            dimension_semantics=("arbitrary",),
            vmem_limit_bytes=vmem_limit,
        ),
    )(cb_flat, a_flat)

    # k-row gather + weighted sum (k*D elements) is left to XLA: an in-kernel DMA
    # gather would need vector->scalar index extraction for make_async_copy and buys
    # no measurable HBM-traffic win over this form (codebook is still read only once).
    w = w_pad[0, :top_k]                                       # (k,)  f32
    idx = idx_pad[0, :top_k]                                   # (k,)  int32
    rows = jnp.take(codebook.reshape(n, d), idx, axis=0).astype(jnp.float32)
    out = jnp.sum(w[:, None] * rows, axis=0)
    return out.astype(codebook.dtype).reshape((1,) + chw)


def _reference(codebook, anchor_noise, top_k, *, precision=lax.Precision.HIGHEST):
    """Pure-JAX reference mirroring the PyTorch forward."""
    n = codebook.shape[0]
    a = anchor_noise.reshape(1, -1)
    c = codebook.reshape(n, -1)
    a = a / jnp.maximum(jnp.linalg.norm(a, axis=1, keepdims=True), 1e-12)
    c = c / jnp.maximum(jnp.linalg.norm(c, axis=1, keepdims=True), 1e-12)
    cos = jnp.matmul(a, c.T, precision=precision)[0]
    vals, idx = lax.top_k(cos, top_k)
    w = jax.nn.softmax(vals / 0.1)
    topk_vectors = codebook[idx]
    return jnp.sum(w[:, None, None, None] * topk_vectors, axis=0, keepdims=True)


if __name__ == "__main__":
    key = jax.random.PRNGKey(0)
    k1, k2, k3, k4 = jax.random.split(key, 4)

    # Case 1: shapes implied by the module (small codebook of noise maps).
    N, C, H, W = 16, 4, 8, 8
    TOP_K = 4
    codebook = jax.random.normal(k1, (N, C, H, W), dtype=jnp.float32)
    anchor_noise = jax.random.normal(k2, (1, C, H, W), dtype=jnp.float32)

    ref = jax.block_until_ready(_reference(codebook, anchor_noise, TOP_K))
    out_hi = jax.block_until_ready(
        softmax_attention(codebook, anchor_noise, TOP_K,
                          precision=lax.Precision.HIGHEST))
    assert out_hi.shape == (1, C, H, W)
    assert jnp.allclose(out_hi, ref, atol=1e-4, rtol=1e-4), "case-1 mismatch vs reference"

    # Default (fast) path per the perf review: single-pass MXU precision.  bf16 MXU
    # rounding slightly perturbs the cosine ranking/softmax, so only sanity-check it.
    out_fast = jax.block_until_ready(softmax_attention(codebook, anchor_noise, TOP_K))
    assert out_fast.shape == (1, C, H, W)
    assert bool(jnp.all(jnp.isfinite(out_fast)))

    # Case 2: exercises multi-tile streaming plus N- and D-padding (3 tiles forced).
    N2, C2, H2, W2 = 300, 3, 7, 5
    TOP_K2 = 5
    codebook2 = jax.random.normal(k3, (N2, C2, H2, W2), dtype=jnp.float32)
    anchor2 = jax.random.normal(k4, (1, C2, H2, W2), dtype=jnp.float32)
    ref2 = jax.block_until_ready(_reference(codebook2, anchor2, TOP_K2))
    out2 = jax.block_until_ready(
        softmax_attention(codebook2, anchor2, TOP_K2,
                          precision=lax.Precision.HIGHEST,
                          target_tile_bytes=64 * 1024))
    assert out2.shape == (1, C2, H2, W2)
    assert jnp.allclose(out2, ref2, atol=1e-4, rtol=1e-4), "case-2 mismatch vs reference"

    print("KERNEL_OK")
</pallas_src>

<mosaic_0001>
module attributes {stable_mosaic.version = 11 : i64} {
  func.func @_cos_topk_kernel(%arg0: i32, %arg1: memref<16x256xf32, #tpu.memory_space<vmem>>, %arg2: memref<1x256xf32, #tpu.memory_space<vmem>>, %arg3: memref<1x128xf32, #tpu.memory_space<vmem>>, %arg4: memref<1x128xi32, #tpu.memory_space<vmem>>, %arg5: memref<1x16xf32, #tpu.memory_space<vmem>>) attributes {dimension_semantics = [#tpu.dimension_semantics<arbitrary>], iteration_bounds = array<i64: 1>, scalar_prefetch = 0 : i64, scratch_operands = 1 : i64, tpu.core_type = #tpu.core_type<tc>, window_params = [{transform_indices = @transform_0, window_bounds = array<i64: 16, 256>}, {pipeline_mode = #tpu.pipeline_mode<synchronous>, transform_indices = @transform_1, window_bounds = array<i64: 1, 256>}, {pipeline_mode = #tpu.pipeline_mode<synchronous>, transform_indices = @transform_2, window_bounds = array<i64: 1, 128>}, {pipeline_mode = #tpu.pipeline_mode<synchronous>, transform_indices = @transform_3, window_bounds = array<i64: 1, 128>}]} {
    %c0 = arith.constant 0 : index
    %c0_0 = arith.constant 0 : index
    %0 = vector.load %arg1[%c0, %c0_0] : memref<16x256xf32, #tpu.memory_space<vmem>>, vector<16x256xf32>
    %c0_1 = arith.constant 0 : index
    %c0_2 = arith.constant 0 : index
    %1 = vector.load %arg2[%c0_1, %c0_2] : memref<1x256xf32, #tpu.memory_space<vmem>>, vector<1x256xf32>
    %cst = arith.constant dense<0.000000e+00> : vector<1x16xf32>
    %2 = tpu.matmul %1, %0, %cst {dimension_numbers = #tpu.dot_dimension_numbers<[1], [1], [0], [0], [0, 0, 1, 0], [], []>, precision = #tpu.contract_precision<fp32>} : vector<1x256xf32>, vector<16x256xf32>, vector<1x16xf32> -> vector<1x16xf32>
    %cst_3 = arith.constant 1.000000e+00 : f32
    %3 = vector.broadcast %cst_3 : f32 to vector<1x256xf32>
    %4 = arith.mulf %0, %0 : vector<16x256xf32>
    %cst_4 = arith.constant dense<0.000000e+00> : vector<1x16xf32>
    %5 = tpu.matmul %3, %4, %cst_4 {dimension_numbers = #tpu.dot_dimension_numbers<[1], [1], [0], [0], [0, 0, 1, 0], [], []>, precision = #tpu.contract_precision<fp32>} : vector<1x256xf32>, vector<16x256xf32>, vector<1x16xf32> -> vector<1x16xf32>
    %cst_5 = arith.constant 1.000000e-24 : f32
    %6 = vector.broadcast %cst_5 : f32 to vector<1x16xf32>
    %7 = arith.maximumf %5, %6 : vector<1x16xf32>
    %8 = math.rsqrt %7 : vector<1x16xf32>
    %9 = arith.mulf %2, %8 : vector<1x16xf32>
    %c16_i32 = arith.constant 16 : i32
    %10 = arith.muli %arg0, %c16_i32 : i32
    %11 = tpu.iota {dimensions = array<i32: 1>} : vector<1x16xi32>
    %12 = vector.broadcast %10 : i32 to vector<1x16xi32>
    %13 = arith.addi %12, %11 : vector<1x16xi32>
    %c16_i32_6 = arith.constant 16 : i32
    %14 = vector.broadcast %c16_i32_6 : i32 to vector<1x16xi32>
    %15 = arith.cmpi slt, %13, %14 : vector<1x16xi32>
    %cst_7 = arith.constant -1.000000e+30 : f32
    %16 = vector.broadcast %cst_7 : f32 to vector<1x16xf32>
    %17 = arith.select %15, %9, %16 : vector<1x16xi1>, vector<1x16xf32>
    %18 = tpu.iota {dimensions = array<i32: 0>} : vector<1x16xi32>
    %19 = vector.broadcast %arg0 : i32 to vector<1x16xi32>
    %20 = arith.cmpi eq, %18, %19 : vector<1x16xi32>
    %c0_8 = arith.constant 0 : index
    %c0_9 = arith.constant 0 : index
    %21 = vector.load %arg5[%c0_8, %c0_9] : memref<1x16xf32, #tpu.memory_space<vmem>>, vector<1x16xf32>
    %22 = arith.select %20, %17, %21 : vector<1x16xi1>, vector<1x16xf32>
    %c0_10 = arith.constant 0 : index
    %c0_11 = arith.constant 0 : index
    %23 = vector.load %arg5[%c0_10, %c0_11] : memref<1x16xf32, #tpu.memory_space<vmem>>, vector<1x16xf32>
    tpu.vector_store %arg5[%c0_10, %c0_11], %22 {strides = array<i32>} : memref<1x16xf32, #tpu.memory_space<vmem>>, vector<1x16xf32>,
    %c0_i32 = arith.constant 0 : i32
    %24 = arith.cmpi eq, %arg0, %c0_i32 : i32
    %25 = arith.extui %24 : i1 to i32
    %c0_i32_12 = arith.constant 0 : i32
    %26 = arith.cmpi ne, %25, %c0_i32_12 : i32
    scf.if %26 {
      %c0_13 = arith.constant 0 : index
      %c0_14 = arith.constant 0 : index
      %27 = vector.load %arg5[%c0_13, %c0_14] : memref<1x16xf32, #tpu.memory_space<vmem>>, vector<1x16xf32>
      %28 = tpu.iota {dimensions = array<i32: 0>} : vector<1x16xi32>
      %29 = tpu.iota {dimensions = array<i32: 1>} : vector<1x16xi32>
      %c16_i32_15 = arith.constant 16 : i32
      %30 = vector.broadcast %c16_i32_15 : i32 to vector<1x16xi32>
      %31 = arith.muli %28, %30 : vector<1x16xi32>
      %32 = arith.addi %31, %29 : vector<1x16xi32>
      %cst_16 = arith.constant dense<0xFF800000> : vector<1xf32>
      %33 = vector.multi_reduction <maximumf>, %27, %cst_16 [1] : vector<1x16xf32> to vector<1xf32>
      %34 = vector.shape_cast %33 : vector<1xf32> to vector<1x1xf32>
      %cst_17 = arith.constant dense<0xFF800000> : vector<1xf32>
      %35 = vector.multi_reduction <maximumf>, %34, %cst_17 [0] : vector<1x1xf32> to vector<1xf32>
      %36 = vector.shape_cast %35 : vector<1xf32> to vector<1x1xf32>
      %37 = vector.broadcast %36 : vector<1x1xf32> to vector<1x16xf32>
      %38 = arith.cmpf oeq, %27, %37 : vector<1x16xf32>
      %c2147483647_i32 = arith.constant 2147483647 : i32
      %39 = vector.broadcast %c2147483647_i32 : i32 to vector<1x16xi32>
      %40 = arith.select %38, %32, %39 : vector<1x16xi1>, vector<1x16xi32>
      %cst_18 = arith.constant dense<2147483647> : vector<1xi32>
      %41 = vector.multi_reduction <minsi>, %40, %cst_18 [1] : vector<1x16xi32> to vector<1xi32>
      %42 = vector.shape_cast %41 : vector<1xi32> to vector<1x1xi32>
      %cst_19 = arith.constant dense<2147483647> : vector<1xi32>
      %43 = vector.multi_reduction <minsi>, %42, %cst_19 [0] : vector<1x1xi32> to vector<1xi32>
      %44 = vector.shape_cast %43 : vector<1xi32> to vector<1x1xi32>
      %45 = vector.broadcast %44 : vector<1x1xi32> to vector<1x16xi32>
      %46 = arith.cmpi eq, %32, %45 : vector<1x16xi32>
      %cst_20 = arith.constant -1.000000e+30 : f32
      %47 = vector.broadcast %cst_20 : f32 to vector<1x16xf32>
      %48 = arith.select %46, %47, %27 : vector<1x16xi1>, vector<1x16xf32>
      %cst_21 = arith.constant dense<0xFF800000> : vector<1xf32>
      %49 = vector.multi_reduction <maximumf>, %48, %cst_21 [1] : vector<1x16xf32> to vector<1xf32>
      %50 = vector.shape_cast %49 : vector<1xf32> to vector<1x1xf32>
      %cst_22 = arith.constant dense<0xFF800000> : vector<1xf32>
      %51 = vector.multi_reduction <maximumf>, %50, %cst_22 [0] : vector<1x1xf32> to vector<1xf32>
      %52 = vector.shape_cast %51 : vector<1xf32> to vector<1x1xf32>
      %53 = vector.broadcast %52 : vector<1x1xf32> to vector<1x16xf32>
      %54 = arith.cmpf oeq, %48, %53 : vector<1x16xf32>
      %c2147483647_i32_23 = arith.constant 2147483647 : i32
      %55 = vector.broadcast %c2147483647_i32_23 : i32 to vector<1x16xi32>
      %56 = arith.select %54, %32, %55 : vector<1x16xi1>, vector<1x16xi32>
      %cst_24 = arith.constant dense<2147483647> : vector<1xi32>
      %57 = vector.multi_reduction <minsi>, %56, %cst_24 [1] : vector<1x16xi32> to vector<1xi32>
      %58 = vector.shape_cast %57 : vector<1xi32> to vector<1x1xi32>
      %cst_25 = arith.constant dense<2147483647> : vector<1xi32>
      %59 = vector.multi_reduction <minsi>, %58, %cst_25 [0] : vector<1x1xi32> to vector<1xi32>
      %60 = vector.shape_cast %59 : vector<1xi32> to vector<1x1xi32>
      %61 = vector.broadcast %60 : vector<1x1xi32> to vector<1x16xi32>
      %62 = arith.cmpi eq, %32, %61 : vector<1x16xi32>
      %cst_26 = arith.constant -1.000000e+30 : f32
      %63 = vector.broadcast %cst_26 : f32 to vector<1x16xf32>
      %64 = arith.select %62, %63, %48 : vector<1x16xi1>, vector<1x16xf32>
      %cst_27 = arith.constant dense<0xFF800000> : vector<1xf32>
      %65 = vector.multi_reduction <maximumf>, %64, %cst_27 [1] : vector<1x16xf32> to vector<1xf32>
      %66 = vector.shape_cast %65 : vector<1xf32> to vector<1x1xf32>
      %cst_28 = arith.constant dense<0xFF800000> : vector<1xf32>
      %67 = vector.multi_reduction <maximumf>, %66, %cst_28 [0] : vector<1x1xf32> to vector<1xf32>
      %68 = vector.shape_cast %67 : vector<1xf32> to vector<1x1xf32>
      %69 = vector.broadcast %68 : vector<1x1xf32> to vector<1x16xf32>
      %70 = arith.cmpf oeq, %64, %69 : vector<1x16xf32>
      %c2147483647_i32_29 = arith.constant 2147483647 : i32
      %71 = vector.broadcast %c2147483647_i32_29 : i32 to vector<1x16xi32>
      %72 = arith.select %70, %32, %71 : vector<1x16xi1>, vector<1x16xi32>
      %cst_30 = arith.constant dense<2147483647> : vector<1xi32>
      %73 = vector.multi_reduction <minsi>, %72, %cst_30 [1] : vector<1x16xi32> to vector<1xi32>
      %74 = vector.shape_cast %73 : vector<1xi32> to vector<1x1xi32>
      %cst_31 = arith.constant dense<2147483647> : vector<1xi32>
      %75 = vector.multi_reduction <minsi>, %74, %cst_31 [0] : vector<1x1xi32> to vector<1xi32>
      %76 = vector.shape_cast %75 : vector<1xi32> to vector<1x1xi32>
      %77 = vector.broadcast %76 : vector<1x1xi32> to vector<1x16xi32>
      %78 = arith.cmpi eq, %32, %77 : vector<1x16xi32>
      %cst_32 = arith.constant -1.000000e+30 : f32
      %79 = vector.broadcast %cst_32 : f32 to vector<1x16xf32>
      %80 = arith.select %78, %79, %64 : vector<1x16xi1>, vector<1x16xf32>
      %cst_33 = arith.constant dense<0xFF800000> : vector<1xf32>
      %81 = vector.multi_reduction <maximumf>, %80, %cst_33 [1] : vector<1x16xf32> to vector<1xf32>
      %82 = vector.shape_cast %81 : vector<1xf32> to vector<1x1xf32>
      %cst_34 = arith.constant dense<0xFF800000> : vector<1xf32>
      %83 = vector.multi_reduction <maximumf>, %82, %cst_34 [0] : vector<1x1xf32> to vector<1xf32>
      %84 = vector.shape_cast %83 : vector<1xf32> to vector<1x1xf32>
      %85 = vector.broadcast %84 : vector<1x1xf32> to vector<1x16xf32>
      %86 = arith.cmpf oeq, %80, %85 : vector<1x16xf32>
      %c2147483647_i32_35 = arith.constant 2147483647 : i32
      %87 = vector.broadcast %c2147483647_i32_35 : i32 to vector<1x16xi32>
      %88 = arith.select %86, %32, %87 : vector<1x16xi1>, vector<1x16xi32>
      %cst_36 = arith.constant dense<2147483647> : vector<1xi32>
      %89 = vector.multi_reduction <minsi>, %88, %cst_36 [1] : vector<1x16xi32> to vector<1xi32>
      %90 = vector.shape_cast %89 : vector<1xi32> to vector<1x1xi32>
      %cst_37 = arith.constant dense<2147483647> : vector<1xi32>
      %91 = vector.multi_reduction <minsi>, %90, %cst_37 [0] : vector<1x1xi32> to vector<1xi32>
      %92 = vector.shape_cast %91 : vector<1xi32> to vector<1x1xi32>
      %93 = arith.mulf %1, %1 : vector<1x256xf32>
      %cst_38 = arith.constant dense<0.000000e+00> : vector<1xf32>
      %94 = vector.multi_reduction <add>, %93, %cst_38 [1] : vector<1x256xf32> to vector<1xf32>
      %95 = vector.shape_cast %94 : vector<1xf32> to vector<1x1xf32>
      %cst_39 = arith.constant 1.000000e-24 : f32
      %96 = vector.broadcast %cst_39 : f32 to vector<1x1xf32>
      %97 = arith.maximumf %95, %96 : vector<1x1xf32>
      %98 = math.rsqrt %97 : vector<1x1xf32>
      %99 = tpu.iota {dimensions = array<i32: 1>} : vector<1x128xi32>
      %cst_40 = arith.constant -1.000000e+30 : f32
      %100 = vector.broadcast %cst_40 : f32 to vector<1x128xf32>
      %c0_i32_41 = arith.constant 0 : i32
      %101 = vector.broadcast %c0_i32_41 : i32 to vector<1x128xi32>
      %c0_i32_42 = arith.constant 0 : i32
      %102 = vector.broadcast %c0_i32_42 : i32 to vector<1x128xi32>
      %103 = arith.cmpi eq, %99, %102 : vector<1x128xi32>
      %104 = vector.shape_cast %36 : vector<1x1xf32> to vector<1x1xf32>
      %105 = vector.broadcast %104 : vector<1x1xf32> to vector<1x128xf32>
      %106 = arith.select %103, %105, %100 : vector<1x128xi1>, vector<1x128xf32>
      %c0_i32_43 = arith.constant 0 : i32
      %107 = vector.broadcast %c0_i32_43 : i32 to vector<1x128xi32>
      %108 = arith.cmpi eq, %99, %107 : vector<1x128xi32>
      %109 = vector.shape_cast %44 : vector<1x1xi32> to vector<1x1xi32>
      %110 = vector.broadcast %109 : vector<1x1xi32> to vector<1x128xi32>
      %111 = arith.select %108, %110, %101 : vector<1x128xi1>, vector<1x128xi32>
      %c1_i32 = arith.constant 1 : i32
      %112 = vector.broadcast %c1_i32 : i32 to vector<1x128xi32>
      %113 = arith.cmpi eq, %99, %112 : vector<1x128xi32>
      %114 = vector.shape_cast %52 : vector<1x1xf32> to vector<1x1xf32>
      %115 = vector.broadcast %114 : vector<1x1xf32> to vector<1x128xf32>
      %116 = arith.select %113, %115, %106 : vector<1x128xi1>, vector<1x128xf32>
      %c1_i32_44 = arith.constant 1 : i32
      %117 = vector.broadcast %c1_i32_44 : i32 to vector<1x128xi32>
      %118 = arith.cmpi eq, %99, %117 : vector<1x128xi32>
      %119 = vector.shape_cast %60 : vector<1x1xi32> to vector<1x1xi32>
      %120 = vector.broadcast %119 : vector<1x1xi32> to vector<1x128xi32>
      %121 = arith.select %118, %120, %111 : vector<1x128xi1>, vector<1x128xi32>
      %c2_i32 = arith.constant 2 : i32
      %122 = vector.broadcast %c2_i32 : i32 to vector<1x128xi32>
      %123 = arith.cmpi eq, %99, %122 : vector<1x128xi32>
      %124 = vector.shape_cast %68 : vector<1x1xf32> to vector<1x1xf32>
      %125 = vector.broadcast %124 : vector<1x1xf32> to vector<1x128xf32>
      %126 = arith.select %123, %125, %116 : vector<1x128xi1>, vector<1x128xf32>
      %c2_i32_45 = arith.constant 2 : i32
      %127 = vector.broadcast %c2_i32_45 : i32 to vector<1x128xi32>
      %128 = arith.cmpi eq, %99, %127 : vector<1x128xi32>
      %129 = vector.shape_cast %76 : vector<1x1xi32> to vector<1x1xi32>
      %130 = vector.broadcast %129 : vector<1x1xi32> to vector<1x128xi32>
      %131 = arith.select %128, %130, %121 : vector<1x128xi1>, vector<1x128xi32>
      %c3_i32 = arith.constant 3 : i32
      %132 = vector.broadcast %c3_i32 : i32 to vector<1x128xi32>
      %133 = arith.cmpi eq, %99, %132 : vector<1x128xi32>
      %134 = vector.shape_cast %84 : vector<1x1xf32> to vector<1x1xf32>
      %135 = vector.broadcast %134 : vector<1x1xf32> to vector<1x128xf32>
      %136 = arith.select %133, %135, %126 : vector<1x128xi1>, vector<1x128xf32>
      %c3_i32_46 = arith.constant 3 : i32
      %137 = vector.broadcast %c3_i32_46 : i32 to vector<1x128xi32>
      %138 = arith.cmpi eq, %99, %137 : vector<1x128xi32>
      %139 = vector.shape_cast %92 : vector<1x1xi32> to vector<1x1xi32>
      %140 = vector.broadcast %139 : vector<1x1xi32> to vector<1x128xi32>
      %141 = arith.select %138, %140, %131 : vector<1x128xi1>, vector<1x128xi32>
      %142 = vector.broadcast %36 : vector<1x1xf32> to vector<1x128xf32>
      %143 = arith.subf %136, %142 : vector<1x128xf32>
      %cst_47 = arith.constant 1.000000e+01 : f32
      %144 = vector.broadcast %cst_47 : f32 to vector<1x1xf32>
      %145 = arith.mulf %98, %144 : vector<1x1xf32>
      %146 = vector.broadcast %145 : vector<1x1xf32> to vector<1x128xf32>
      %147 = arith.mulf %143, %146 : vector<1x128xf32>
      %c4_i32 = arith.constant 4 : i32
      %148 = vector.broadcast %c4_i32 : i32 to vector<1x128xi32>
      %149 = arith.cmpi slt, %99, %148 : vector<1x128xi32>
      %150 = math.exp %147 : vector<1x128xf32>
      %cst_48 = arith.constant 0.000000e+00 : f32
      %151 = vector.broadcast %cst_48 : f32 to vector<1x128xf32>
      %152 = arith.select %149, %150, %151 : vector<1x128xi1>, vector<1x128xf32>
      %cst_49 = arith.constant dense<0.000000e+00> : vector<1xf32>
      %153 = vector.multi_reduction <add>, %152, %cst_49 [1] : vector<1x128xf32> to vector<1xf32>
      %154 = vector.shape_cast %153 : vector<1xf32> to vector<1x1xf32>
      %155 = vector.broadcast %154 : vector<1x1xf32> to vector<1x128xf32>
      %156 = arith.divf %152, %155 : vector<1x128xf32>
      %c0_50 = arith.constant 0 : index
      %c0_51 = arith.constant 0 : index
      %157 = vector.load %arg3[%c0_50, %c0_51] : memref<1x128xf32, #tpu.memory_space<vmem>>, vector<1x128xf32>
      tpu.vector_store %arg3[%c0_50, %c0_51], %156 {strides = array<i32>} : memref<1x128xf32, #tpu.memory_space<vmem>>, vector<1x128xf32>,
      %c0_52 = arith.constant 0 : index
      %c0_53 = arith.constant 0 : index
      %158 = vector.load %arg4[%c0_52, %c0_53] : memref<1x128xi32, #tpu.memory_space<vmem>>, vector<1x128xi32>
      tpu.vector_store %arg4[%c0_52, %c0_53], %141 {strides = array<i32>} : memref<1x128xi32, #tpu.memory_space<vmem>>, vector<1x128xi32>,
    } else {
    }
    return
  }
  func.func @transform_0(%arg0: i32) -> (i32, i32) {
    %c0_i32 = arith.constant 0 : i32
    %c0_i32_0 = arith.constant 0 : i32
    return %arg0, %c0_i32 : i32, i32
  }
  func.func @transform_1(%arg0: i32) -> (i32, i32) {
    %c0_i32 = arith.constant 0 : i32
    %c0_i32_0 = arith.constant 0 : i32
    %c0_i32_1 = arith.constant 0 : i32
    return %c0_i32, %c0_i32_0 : i32, i32
  }
  func.func @transform_2(%arg0: i32) -> (i32, i32) {
    %c0_i32 = arith.constant 0 : i32
    %c0_i32_0 = arith.constant 0 : i32
    %c0_i32_1 = arith.constant 0 : i32
    return %c0_i32, %c0_i32_0 : i32, i32
  }
  func.func @transform_3(%arg0: i32) -> (i32, i32) {
    %c0_i32 = arith.constant 0 : i32
    %c0_i32_0 = arith.constant 0 : i32
    %c0_i32_1 = arith.constant 0 : i32
    return %c0_i32, %c0_i32_0 : i32, i32
  }
}

</mosaic_0001>

<bundles_post_ra>
// kernel: tpu_custom_call.1
= control target key start
LH: loop header
LB: loop body
LE: loop exit
PB: predicated region body
PF: predicated region fallthrough
CT: control target
= control target key end

     0   :  { %9 = vsyncpa [#allocation4], 0  ;;  %s1500_s0 = inlined_call_operand.hbm [shape: f32[16,256], index: 0, kind: input, shape index: {}]   ;;  %s1501_s1 = inlined_call_operand.hbm [shape: f32[1,256], index: 1, kind: input, shape index: {}]   ;;  %s1502_s2 = inlined_call_operand.hbm [shape: f32[1,128], index: 2, kind: output, shape index: {0}]   ;;  %s1503_s3 = inlined_call_operand.hbm [shape: s32[1,128], index: 3, kind: output, shape index: {1}]  }
   0x1   :  { %10 = vsyncpa [#allocation7], 0 }
   0x2   :  { %11 = vsyncpa [#allocation5], 0 }
   0x3   :  { %12 = vsyncpa [#allocation10], 0  ;;  %s1322_s12 = smov [#allocation3]  }
   0x4   :  { %s18_s13 = sshll.u32 %s1322_s12, 4  ;;  %s19_s13 = int_to_ptr.vmem [resolvable:$true] %s18_s13 }
   0x5   :  { %s1242_s14 = scalar_lea.vmem %s19_s13, 512  ;;  %p1247_p1 = scmp.lt.s32.totalorder %s19_s13, %s19_s13 }
   0x6   :  { %p1243_p0 = scmp.ne.s32.totalorder %s19_s13, %s1242_s14  ;;  %p1248_p2 = scmp.lt.s32.totalorder %s1242_s14, %s1242_s14 }
   0x8   :  { %p1249_p3 = por %p1248_p2, %p1247_p1 }
   0xa   :  { %p1250_p4 = pnand %p1249_p3, %p1243_p0 }
   0xc   :  { %1253 = shalt.err (!%p1250_p4)
}
   0xd   :  { %s1323_s15 = smov 256   ;;  %s1324_s16 = smov 16  }
   0xe   :  { %24 = dma.hbm_to_vmem [thread:$0]  %s1500_s0, 512, %s19_s13, [#allocation4], %s1323_s15, %s1323_s15, %s1324_s16  }
   0xf   :  { %s1325_s19 = smov [#allocation6]  }
  0x10   :  { %s31_s20 = sshll.u32 %s1325_s19, 4  ;;  %s32_s20 = int_to_ptr.vmem [resolvable:$true] %s31_s20 }
  0x11   :  { %s1262_s21 = scalar_lea.vmem %s32_s20, 32  ;;  %p1267_p6 = scmp.lt.s32.totalorder %s32_s20, %s32_s20 }
  0x12   :  { %p1263_p5 = scmp.ne.s32.totalorder %s32_s20, %s1262_s21  ;;  %p1268_p7 = scmp.lt.s32.totalorder %s1262_s21, %s1262_s21 }
  0x14   :  { %p1269_p8 = por %p1268_p7, %p1267_p6 }
  0x16   :  { %p1270_p9 = pnand %p1269_p8, %p1263_p5 }
  0x18   :  { %1273 = shalt.err (!%p1270_p9)
}
  0x19   :  { %34 = dma.hbm_to_vmem [thread:$0]  %s1501_s1, 32, %s32_s20, [#allocation7]  }
  0x1a   :  { %1314 = dma.done.wait [#allocation4], 512  }
  0x1b   :  { %1315 = vsyncadd [#allocation4], 4294966784 }
  0x1c   :  { %1316 = dma.done.wait [#allocation7], 32  }
  0x1d   :  { %1317 = vsyncadd [#allocation7], 4294967264  ;;  %v47_v0 = vlaneseq  ;;  %v44_v4 = vld [vmem:[#allocation3 + $0x18] sm:$0xff]  ;;  %v43_v5 = vld [vmem:[#allocation3 + $0x10] sm:$0xff]  ;;  %vm1047_vm2 = vcmask 122880   ;;  %vm1154_vm12 = vcmask 1040384  }
  0x1e   :  { %v42_v6 = vld [vmem:[#allocation3 + $0x8] sm:$0xff]  ;;  %v1361_v7 = vand.u32 4294901760, %v44_v4  ;;  %v1363_v8 = vand.u32 4294901760, %v43_v5  ;;  %v41_v10 = vld [vmem:[#allocation3] sm:$0xff]  ;;  %v558_v36 = vmul.f32 %v44_v4, %v44_v4  ;;  %v557_v42 = vmul.f32 %v43_v5, %v43_v5  ;;  %s1328_s0 = smov [#allocation8]  }
  0x1f   :  { %v1357_v1 = vshrl.u32 %v47_v0, 7  ;;  %v1365_v9 = vand.u32 4294901760, %v42_v6  ;;  %v1367_v11 = vld [vmem:[#allocation6] sm:$0x3]  ;;  %v1369_v12 = vand.u32 4294901760, %v41_v10  ;;  %v556_v44 = vmul.f32 %v42_v6, %v42_v6  ;;  %s1194_s1 = sshll.u32 %s1328_s0, 4  ;;  %s1195_s1 = int_to_ptr.vmem [resolvable:$true] %s1194_s1 }
  0x20   :  { %86 = vmatprep.subr.mxu0 %v1361_v7  ;;  %v170_v15 = vsub.f32 %v44_v4, %v1361_v7  ;;  %v176_v16 = vsub.f32 %v43_v5, %v1363_v8  ;;  %v1396_v43 = vand.u32 4294901760, %v558_v36  ;;  %v1398_v45 = vand.u32 4294901760, %v557_v42  ;;  %s1274_s24 = scalar_lea.vmem %s1195_s1, 16  ;;  %s1278_s25 = scalar_lea.vmem %s1195_s1, 32 }
  0x21   :  { %v53_v2 = vsub.s32 1, %v1357_v1  ;;  %v49_v3 = vsub.s32 0, %v1357_v1  ;;  %v182_v17 = vsub.f32 %v42_v6, %v1365_v9  ;;  %88 = vmatpush1.xpose.msra.mxu0 %v1363_v8  ;;  %v1387_v20 = vsub.f32 %v41_v10, %v1369_v12  ;;  %p1275_p10 = scmp.ne.s32.totalorder %s1195_s1, %s1274_s24  ;;  %p1279_p11 = scmp.lt.s32.totalorder %s1195_s1, %s1195_s1 }
  0x22   :  { %90 = vmatprep.subr.mxu0 %v1365_v9  ;;  %v171_v21 = vand.u32 4294901760, %v170_v15  ;;  %v177_v22 = vand.u32 4294901760, %v176_v16  ;;  %v555_v46 = vmul.f32 %v41_v10, %v41_v10  ;;  %v1401_v47 = vand.u32 4294901760, %v556_v44  ;;  %p1280_p12 = scmp.lt.s32.totalorder %s1278_s25, %s1274_s24 }
  0x23   :  { %v54_v13 = vrot.slane %v1367_v11, %v53_v2  ;;  %v50_v14 = vrot.slane %v1367_v11, %v49_v3  ;;  %v183_v23 = vand.u32 4294901760, %v182_v17  ;;  %v189_v26 = vand.u32 4294901760, %v1387_v20 }
  0x24   :  { %v172_v27 = vsub.f32 %v170_v15, %v171_v21  ;;  %v178_v28 = vsub.f32 %v176_v16, %v177_v22  ;;  %v662_v48 = vsub.f32 %v558_v36, %v1396_v43  ;;  %v668_v49 = vsub.f32 %v557_v42, %v1398_v45  ;;  %p1281_p13 = por %p1280_p12, %p1279_p11 }
  0x25   :  { %v1382_v18 = vand.u32 4294901760, %v54_v13  ;;  %v1384_v19 = vand.u32 4294901760, %v50_v14  ;;  %v184_v29 = vsub.f32 %v182_v17, %v183_v23  ;;  %92 = vmatpush1.xpose.msra.mxu0 %v1369_v12  ;;  %v190_v32 = vsub.f32 %v1387_v20, %v189_v26 }
  0x26   :  { %v173_v33 = vand.u32 4294901760, %v172_v27  ;;  %v179_v34 = vand.u32 4294901760, %v178_v28  ;;  %263 = vmatprep.subr.mxu0 %v170_v15  ;;  %v1408_v50 = vand.u32 4294901760, %v555_v46  ;;  %v663_v51 = vand.u32 4294901760, %v662_v48  ;;  %p1282_p0 = pnand %p1281_p13, %p1275_p10 }
  0x27   :  { %v126_v24 = vsub.f32 %v54_v13, %v1382_v18  ;;  %v132_v25 = vsub.f32 %v50_v14, %v1384_v19  ;;  %226 = vmatprep.mubr.f32.mxu1 %v1382_v18  ;;  %v185_v35 = vand.u32 4294901760, %v184_v29  ;;  %v191_v41 = vand.u32 4294901760, %v190_v32 }
  0x28   :  { %174 = vmatprep.subr.mxu1 %v173_v33  ;;  %v674_v52 = vsub.f32 %v556_v44, %v1401_v47  ;;  %v680_v53 = vsub.f32 %v555_v46, %v1408_v50  ;;  %v669_v54 = vand.u32 4294901760, %v668_v49  ;;  %v664_v55 = vsub.f32 %v662_v48, %v663_v51  ;;  %v1045_v46 = vld [vmem:[#allocation2] sm:$0x1] }
  0x29   :  { %v127_v30 = vand.u32 4294901760, %v126_v24  ;;  %v133_v31 = vand.u32 4294901760, %v132_v25  ;;  %180 = vmatpush1.xpose.msra.mxu1 %v179_v34  ;;  %v1326_v4 = vmov 0.0   ;;  %v1327_v6 = vmov 1.0  }
  0x2a   :  { %186 = vmatprep.subr.mxu1 %v185_v35  ;;  %v675_v56 = vand.u32 4294901760, %v674_v52  ;;  %v670_v57 = vsub.f32 %v668_v49, %v669_v54  ;;  %v681_v58 = vand.u32 4294901760, %v680_v53  ;;  %v665_v59 = vand.u32 4294901760, %v664_v55 }
  0x2b   :  { %v128_v37 = vsub.f32 %v126_v24, %v127_v30  ;;  %v134_v38 = vsub.f32 %v132_v25, %v133_v31  ;;  %vm1044_vm1 = vcmp.eq.s32.totalorder %v1357_v1, 0 }
  0x2c   :  { %v676_v60 = vsub.f32 %v674_v52, %v675_v56  ;;  %v671_v61 = vand.u32 4294901760, %v670_v57  ;;  %v682_v62 = vsub.f32 %v680_v53, %v681_v58 }
  0x2d   :  { %v129_v39 = vand.u32 4294901760, %v128_v37  ;;  %v135_v40 = vand.u32 4294901760, %v134_v38  ;;  %192 = vmatpush1.xpose.msra.mxu1 %v191_v41  ;;  %v1435_v41 = vand.u32 127, %v47_v0  ;;  %v1054_v0 = vmul.u32 16, %v1357_v1 }
  0x2e   :  { %344 = vmatprep.subr.mxu1 %v1361_v7  ;;  %v677_v63 = vand.u32 4294901760, %v676_v60  ;;  %v683_v5 = vand.u32 4294901760, %v682_v62 }
  0x2f   :  { %130 = vmatprep.mubr.f32.mxu0 %v129_v39  ;;  %vm1039_vm0 = vcmp.lt.s32.totalorder %v1435_v41, 16  ;;  %vm1162_vm8 = vcmp.eq.s32.totalorder %v1435_v41, 0  ;;  %vm1165_vm9 = vcmp.eq.s32.totalorder %v1435_v41, 1  ;;  %vm1168_vm14 = vcmp.eq.s32.totalorder %v1435_v41, 2 }
  0x30   :  { %136 = vmatmul.mubr.f32.vlgmr.msra.gmra.mxu0 %v135_v40  ;;  %228 = vmatmul.mubr.f32.vlgmr.msra.gmra.mxu1 %v1384_v19 }
  0x31   :  { %266 = vmatpush1.xpose.msra.mxu0 %v176_v16  ;;  %307 = vmatprep.mubr.f32.mxu0 %v126_v24 }
  0x32   :  { %269 = vmatprep.subr.mxu0 %v182_v17  ;;  %346 = vmatpush1.xpose.msra.mxu1 %v1363_v8 }
  0x33   :  { %348 = vmatprep.subr.mxu1 %v1365_v9  ;;  %386 = vmatprep.mubr.f32.mxu1 %v127_v30 }
  0x35   :  { %272 = vmatpush1.xpose.msra.mxu0 %v1387_v20 }
  0x36   :  { %426 = vmatprep.subr.mxu0 %v171_v21  ;;  %350 = vmatpush1.xpose.msra.mxu1 %v1369_v12 }
  0x37   :  { %508 = vmatprep.subr.mxu1 %v1361_v7 }
  0x38   :  { %310 = vmatmul.mubr.f32.vlgmr.msra.gmra.mxu0 %v132_v25 }
  0x39   :  { %430 = vmatpush1.xpose.msra.mxu0 %v177_v22  ;;  %472 = vmatprep.mubr.f32.mxu0 %v1382_v18 }
  0x3a   :  { %434 = vmatprep.subr.mxu0 %v183_v23  ;;  %390 = vmatmul.mubr.f32.vlgmr.msra.gmra.mxu1 %v133_v31 }
  0x3b   :  { %510 = vmatpush1.xpose.msra.mxu1 %v1363_v8  ;;  %548 = vmatprep.mubr.f32.mxu1 %v1382_v18 }
  0x3c   :  { %512 = vmatprep.subr.mxu1 %v1365_v9 }
  0x3d   :  { %438 = vmatpush1.xpose.msra.mxu0 %v189_v26 }
  0x3e   :  { %588 = vmatprep.subr.mxu0 %v1396_v43 }
  0x3f   :  { %514 = vmatpush1.xpose.msra.mxu1 %v1369_v12 }
  0x40   :  { %474 = vmatmul.mubr.f32.vlgmr.msra.gmra.mxu0 %v1384_v19  ;;  %666 = vmatprep.subr.mxu1 %v665_v59 }
  0x41   :  { %590 = vmatpush1.xpose.msra.mxu0 %v1398_v45  ;;  %627 = vmatprep.mubr.f32.mxu0 %v1326_v4 }
  0x42   :  { %592 = vmatprep.subr.mxu0 %v1401_v47  ;;  %550 = vmatmul.mubr.f32.vlgmr.msra.gmra.mxu1 %v1384_v19 }
  0x43   :  { %672 = vmatpush1.xpose.msra.mxu1 %v671_v61  ;;  %717 = vmatprep.mubr.f32.mxu1 %v1327_v6 }
  0x44   :  { %678 = vmatprep.subr.mxu1 %v677_v63 }
  0x45   :  { %594 = vmatpush1.xpose.msra.mxu0 %v1408_v50 }
  0x46   :  { %753 = vmatprep.subr.mxu0 %v662_v48 }
  0x47   :  { %684 = vmatpush1.xpose.msra.mxu1 %v683_v5 }
  0x48   :  { %628 = vmatmul.mubr.f32.vlgmr.msra.gmra.mxu0 %v1326_v4  ;;  %830 = vmatprep.subr.mxu1 %v1396_v43 }
  0x49   :  { %756 = vmatpush1.xpose.msra.mxu0 %v668_v49  ;;  %795 = vmatprep.mubr.f32.mxu0 %v1326_v4 }
  0x4a   :  { %759 = vmatprep.subr.mxu0 %v674_v52  ;;  %718 = vmatmul.mubr.f32.vlgmr.msra.gmra.mxu1 %v1327_v6 }
  0x4b   :  { %832 = vmatpush1.xpose.msra.mxu1 %v1398_v45  ;;  %869 = vmatprep.mubr.f32.mxu1 %v1326_v4 }
  0x4c   :  { %834 = vmatprep.subr.mxu1 %v1401_v47 }
  0x4d   :  { %762 = vmatpush1.xpose.msra.mxu0 %v680_v53 }
  0x4e   :  { %906 = vmatprep.subr.mxu0 %v663_v51  ;;  %v1443_v51 = vadd.s32 %v1054_v0, %v1435_v41 }
  0x4f   :  { %836 = vmatpush1.xpose.msra.mxu1 %v1408_v50 }
  0x50   :  { %796 = vmatmul.mubr.f32.vlgmr.msra.gmra.mxu0 %v1326_v4  ;;  %986 = vmatprep.subr.mxu1 %v1396_v43 }
  0x51   :  { %910 = vmatpush1.xpose.msra.mxu0 %v669_v54  ;;  %951 = vmatprep.mubr.f32.mxu0 %v1327_v6 }
  0x52   :  { %914 = vmatprep.subr.mxu0 %v675_v56  ;;  %870 = vmatmul.mubr.f32.vlgmr.msra.gmra.mxu1 %v1326_v4 }
  0x53   :  { %988 = vmatpush1.xpose.msra.mxu1 %v1398_v45  ;;  %1025 = vmatprep.mubr.f32.mxu1 %v1327_v6 }
  0x54   :  { %990 = vmatprep.subr.mxu1 %v1401_v47 }
  0x55   :  { %918 = vmatpush1.xpose.msra.mxu0 %v681_v58 }
  0x57   :  { %992 = vmatpush1.xpose.msra.mxu1 %v1408_v50 }
  0x58   :  { %952 = vmatmul.mubr.f32.vlgmr.msra.gmra.mxu0 %v1327_v6 }
  0x5a   :  { %1026 = vmatmul.mubr.f32.vlgmr.msra.gmra.mxu1 %v1327_v6 }
  0xf0   :  { %v137_v7 = vpop.f32.mrf.mxu0  ;;  %v229_v9 = vpop.f32.mrf.mxu1 }
  0xf1   :  { %v230_v38 = vadd.f32 %v229_v9, %v137_v7 }
  0xf2   :  { %v139_v8 = vpop.f32.mrf.mxu0  ;;  %v231_v10 = vpop.f32.mrf.mxu1 }
  0xf8   :  { %v311_v12 = vpop.f32.mrf.mxu0 }
  0xf9   :  { %v312_v39 = vadd.f32 %v311_v12, %v230_v38 }
  0xfa   :  { %v313_v13 = vpop.f32.mrf.mxu0  ;;  %v391_v14 = vpop.f32.mrf.mxu1 }
  0xfb   :  { %v392_v40 = vadd.f32 %v391_v14, %v312_v39 }
  0xfc   :  { %v393_v15 = vpop.f32.mrf.mxu1 }
 0x100   :  { %v475_v16 = vpop.f32.mrf.mxu0 }
 0x101   :  { %v476_v42 = vadd.f32 %v475_v16, %v392_v40 }
 0x102   :  { %v477_v17 = vpop.f32.mrf.mxu0  ;;  %v551_v18 = vpop.f32.mrf.mxu1 }
 0x103   :  { %v552_v43 = vadd.f32 %v551_v18, %v476_v42 }
 0x104   :  { %v553_v19 = vpop.f32.mrf.mxu1 }
 0x108   :  { %v629_v20 = vpop.f32.mrf.mxu0 }
 0x10a   :  { %v631_v21 = vpop.f32.mrf.mxu0  ;;  %v719_v22 = vpop.f32.mrf.mxu1 }
 0x10b   :  { %v720_v25 = vadd.f32 %v719_v22, %v629_v20 }
 0x10c   :  { %v721_v23 = vpop.f32.mrf.mxu1 }
 0x110   :  { %v797_v24 = vpop.f32.mrf.mxu0 }
 0x111   :  { %v798_v28 = vadd.f32 %v797_v24, %v720_v25 }
 0x112   :  { %v799_v26 = vpop.f32.mrf.mxu0  ;;  %v871_v27 = vpop.f32.mrf.mxu1 }
 0x113   :  { %v872_v30 = vadd.f32 %v871_v27, %v798_v28 }
 0x114   :  { %v873_v29 = vpop.f32.mrf.mxu1 }
 0x118   :  { %v953_v31 = vpop.f32.mrf.mxu0 }
 0x119   :  { %v954_v33 = vadd.f32 %v953_v31, %v872_v30 }
 0x11a   :  { %v955_v32 = vpop.f32.mrf.mxu0  ;;  %v1027_v34 = vpop.f32.mrf.mxu1 }
 0x11b   :  { %v1028_v35 = vadd.f32 %v1027_v34, %v954_v33  ;;  %v1142_v32 = vmul.f32 %v1367_v11, %v1367_v11 }
 0x11c   :  { %v1029_v36 = vpop.f32.mrf.mxu1 }
 0x11d   :  { %v1031_v37 = vmax.f32 %v1028_v35, 1e-24  ;;  %v1147_v34 = vrot.slane %v1142_v32, %v49_v3  ;;  %v1151_v35 = vrot.slane %v1142_v32, %v53_v2 }
 0x11f   :  { %1226 = vrsqrt.f32 %v1031_v37  ;;  %v1155_v38 = vsel %vm1154_vm12, %v1147_v34, 0.0  ;;  %v1156_v39 = vsel %vm1154_vm12, %v1151_v35, 0.0 }
 0x120   :  { %v1157_v42 = vadd.f32 %v1156_v39, %v1155_v38 }
 0x12c   :  { %v1227_v44 = vpop.eup %1226 }
 0x12d   :  { %v1033_v45 = vmul.f32 %v1227_v44, %v552_v43 }
 0x12f   :  { %v1040_v47 = vsel %vm1039_vm0, %v1033_v45, -1e+30  ;;  %vm1171_vm0 = vcmp.eq.s32.totalorder %v1435_v41, 3 }
 0x130   :  { %v1046_v48 = vsel %vm1044_vm1, %v1040_v47, %v1045_v46 }
 0x131   :  { %1048 = vst.msk [vmem:[#allocation2] sm:$0x1] %vm1047_vm2, %v1046_v48 }
 0x138   :  { %v1053_v49 = vld [vmem:[#allocation2] sm:$0x1] }
 0x139   :  { %v1056_v50 = vsel %vm1047_vm2, %v1053_v49, -inf }
 0x13a   :  { %1057 = vmax.xlane.f32.xlu0 %v1056_v50 }
 0x1c3   :  { %v1445_v52 = vpop.xlane.xlu0 %1057 }
 0x1c4   :  { %vm1059_vm3 = vcmp.eq.f32.partialorder %v1053_v49, %v1445_v52  ;;  %v1163_v50 = vsel %vm1162_vm8, %v1445_v52, -1e+30 }
 0x1c5   :  { %v1060_v53 = vsel %vm1059_vm3, %v1443_v51, 2147483647  ;;  %vm1177_vm3 = vcmp.lt.s32.totalorder %v1435_v41, 4 }
 0x1c6   :  { %v1061_v54 = vsel %vm1047_vm2, %v1060_v53, 2147483647 }
 0x1c7   :  { %v1063_v55 = vshra.s32 %v1061_v54, 16  ;;  %v1062_v57 = vand.u32 65535, %v1061_v54 }
 0x1c9   :  { %v1065_v56 = vcvt.s32.f32 %v1063_v55  ;;  %v1064_v59 = vcvt.s32.f32 %v1062_v57 }
 0x1cb   :  { %1066 = vmin.xlane.f32.xlu0 %v1065_v56 }
 0x254   :  { %v1067_v58 = vpop.xlane.xlu0 %1066 }
 0x255   :  { %vm1068_vm4 = vcmp.eq.f32.partialorder %v1065_v56, %v1067_v58  ;;  %v1073_v61 = vcvt.f32.s32 %v1067_v58 }
 0x256   :  { %v1069_v60 = vsel %vm1068_vm4, %v1064_v59, inf }
 0x257   :  { %1070 = vmin.xlane.f32.xlu1 %v1069_v60  ;;  %v1074_v63 = vshll.u32 %v1073_v61, 16 }
 0x2e0   :  { %v1071_v62 = vpop.xlane.xlu1 %1070 }
 0x2e1   :  { %v1072_v4 = vcvt.f32.s32 %v1071_v62 }
 0x2e3   :  { %v1075_v5 = vadd.s32 %v1074_v63, %v1072_v4 }
 0x2e5   :  { %vm1076_vm5 = vcmp.eq.s32.totalorder %v1443_v51, %v1075_v5  ;;  %v1164_v23 = vsel %vm1162_vm8, %v1075_v5, 0 }
 0x2e6   :  { %v1077_v6 = vsel %vm1076_vm5, -1e+30, %v1053_v49 }
 0x2e7   :  { %v1078_v7 = vsel %vm1047_vm2, %v1077_v6, -inf }
 0x2e8   :  { %1079 = vmax.xlane.f32.xlu1 %v1078_v7 }
 0x371   :  { %v1452_v8 = vpop.xlane.xlu1 %1079 }
 0x372   :  { %vm1081_vm6 = vcmp.eq.f32.partialorder %v1077_v6, %v1452_v8  ;;  %v1166_v0 = vsel %vm1165_vm9, %v1452_v8, %v1163_v50 }
 0x373   :  { %v1082_v9 = vsel %vm1081_vm6, %v1443_v51, 2147483647 }
 0x374   :  { %v1083_v10 = vsel %vm1047_vm2, %v1082_v9, 2147483647 }
 0x375   :  { %v1085_v12 = vshra.s32 %v1083_v10, 16  ;;  %v1084_v14 = vand.u32 65535, %v1083_v10 }
 0x377   :  { %v1087_v13 = vcvt.s32.f32 %v1085_v12  ;;  %v1086_v16 = vcvt.s32.f32 %v1084_v14 }
 0x379   :  { %1088 = vmin.xlane.f32.xlu0 %v1087_v13 }
 0x402   :  { %v1089_v15 = vpop.xlane.xlu0 %1088 }
 0x403   :  { %vm1090_vm7 = vcmp.eq.f32.partialorder %v1087_v13, %v1089_v15  ;;  %v1095_v18 = vcvt.f32.s32 %v1089_v15 }
 0x404   :  { %v1091_v17 = vsel %vm1090_vm7, %v1086_v16, inf }
 0x405   :  { %1092 = vmin.xlane.f32.xlu1 %v1091_v17  ;;  %v1096_v20 = vshll.u32 %v1095_v18, 16 }
 0x48e   :  { %v1093_v19 = vpop.xlane.xlu1 %1092 }
 0x48f   :  { %v1094_v21 = vcvt.f32.s32 %v1093_v19 }
 0x491   :  { %v1097_v22 = vadd.s32 %v1096_v20, %v1094_v21 }
 0x493   :  { %v1167_v24 = vsel %vm1165_vm9, %v1097_v22, %v1164_v23  ;;  %vm1098_vm10 = vcmp.eq.s32.totalorder %v1443_v51, %v1097_v22 }
 0x494   :  { %v1099_v25 = vsel %vm1098_vm10, -1e+30, %v1077_v6 }
 0x495   :  { %v1100_v26 = vsel %vm1047_vm2, %v1099_v25, -inf }
 0x496   :  { %1101 = vmax.xlane.f32.xlu0 %v1100_v26 }
 0x51f   :  { %v1102_v27 = vpop.xlane.xlu0 %1101 }
 0x520   :  { %vm1103_vm11 = vcmp.eq.f32.partialorder %v1099_v25, %v1102_v27  ;;  %v1169_v53 = vsel %vm1168_vm14, %v1102_v27, %v1166_v0 }
 0x521   :  { %v1104_v28 = vsel %vm1103_vm11, %v1443_v51, 2147483647 }
 0x522   :  { %v1105_v29 = vsel %vm1047_vm2, %v1104_v28, 2147483647 }
 0x523   :  { %v1107_v30 = vshra.s32 %v1105_v29, 16  ;;  %v1106_v33 = vand.u32 65535, %v1105_v29 }
 0x525   :  { %v1109_v31 = vcvt.s32.f32 %v1107_v30  ;;  %v1108_v37 = vcvt.s32.f32 %v1106_v33 }
 0x527   :  { %1110 = vmin.xlane.f32.xlu1 %v1109_v31 }
 0x5b0   :  { %v1111_v36 = vpop.xlane.xlu1 %1110 }
 0x5b1   :  { %vm1112_vm13 = vcmp.eq.f32.partialorder %v1109_v31, %v1111_v36  ;;  %v1117_v11 = vcvt.f32.s32 %v1111_v36 }
 0x5b2   :  { %v1113_v40 = vsel %vm1112_vm13, %v1108_v37, inf }
 0x5b3   :  { %1114 = vmin.xlane.f32.xlu0 %v1113_v40  ;;  %v1118_v44 = vshll.u32 %v1117_v11, 16 }
 0x5b7   :  { %1158 = vadd.xlane.f32.xlu0 %v1157_v42 }
 0x63c   :  { %v1115_v43 = vpop.xlane.xlu0 %1114 }
 0x63d   :  { %v1116_v45 = vcvt.f32.s32 %v1115_v43 }
 0x63f   :  { %v1119_v3 = vadd.s32 %v1118_v44, %v1116_v45 }
 0x640   :  { %v1159_v47 = vpop.xlane.xlu0 %1158 }
 0x641   :  { %vm1120_vm15 = vcmp.eq.s32.totalorder %v1443_v51, %v1119_v3  ;;  %v1170_v1 = vsel %vm1168_vm14, %v1119_v3, %v1167_v24  ;;  %v1160_v48 = vmax.f32 %v1159_v47, 1e-24 }
 0x642   :  { %v1121_v2 = vsel %vm1120_vm15, -1e+30, %v1099_v25 }
 0x643   :  { %v1122_v46 = vsel %vm1047_vm2, %v1121_v2, -inf  ;;  %1228 = vrsqrt.f32 %v1160_v48 }
 0x644   :  { %1123 = vmax.xlane.f32.xlu1 %v1122_v46 }
 0x650   :  { %v1229_v49 = vpop.eup %1228 }
 0x651   :  { %v1175_v54 = vmul.f32 10.0, %v1229_v49 }
 0x6cd   :  { %v1124_v55 = vpop.xlane.xlu1 %1123 }
 0x6ce   :  { %vm1125_vm1 = vcmp.eq.f32.partialorder %v1121_v2, %v1124_v55  ;;  %v1172_v56 = vsel %vm1171_vm0, %v1124_v55, %v1169_v53 }
 0x6cf   :  { %v1126_v57 = vsel %vm1125_vm1, %v1443_v51, 2147483647  ;;  %v1174_v58 = vsub.f32 %v1172_v56, %v1445_v52 }
 0x6d0   :  { %v1127_v59 = vsel %vm1047_vm2, %v1126_v57, 2147483647 }
 0x6d1   :  { %v1176_v60 = vmul.f32 %v1175_v54, %v1174_v58  ;;  %v1129_v61 = vshra.s32 %v1127_v59, 16  ;;  %v1128_v7 = vand.u32 65535, %v1127_v59 }
 0x6d3   :  { %v1178_v62 = vmul.f32 1.442695, %v1176_v60  ;;  %v1131_v63 = vcvt.s32.f32 %v1129_v61  ;;  %v1130_v51 = vcvt.s32.f32 %v1128_v7 }
 0x6d5   :  { %1230 = vpow2.f32 %v1178_v62  ;;  %1132 = vmin.xlane.f32.xlu1 %v1131_v63 }
 0x6e2   :  { %v1231_v4 = vpop.eup %1230 }
 0x6e3   :  { %v1180_v5 = vsel %vm1177_vm3, %v1231_v4, 0.0 }
 0x6e4   :  { %v1181_v6 = vsel %vm1154_vm12, %v1180_v5, 0.0 }
 0x6e5   :  { %1182 = vadd.xlane.f32.xlu0 %v1181_v6 }
 0x75e   :  { %v1133_v8 = vpop.xlane.xlu1 %1132 }
 0x75f   :  { %vm1134_vm4 = vcmp.eq.f32.partialorder %v1131_v63, %v1133_v8 }
 0x760   :  { %v1135_v52 = vsel %vm1134_vm4, %v1130_v51, inf }
 0x761   :  { %1136 = vmin.xlane.f32.xlu1 %v1135_v52 }
 0x76e   :  { %v1183_v9 = vpop.xlane.xlu0 %1182 }
 0x76f   :  { %1232 = vrcp.f32 %v1183_v9 }
 0x77c   :  { %v1233_v10 = vpop.eup %1232 }
 0x77d   :  { %v1185_v12 = vmul.f32 %v1233_v10, %v1180_v5 }
 0x77f   :  { %1186 = vst [vmem:[#allocation8] sm:$0x1] %v1185_v12 }
 0x780   :  { %1285 = shalt.err (!%p1282_p0)
}
 0x781   :  { %1197 = dma.vmem_to_hbm [thread:$0]  %s1195_s1, 16, %s1502_s2, [#allocation5]   ;;  %v1139_v13 = vcvt.f32.s32 %v1133_v8 }
 0x782   :  { %s1329_s28 = smov [#allocation9]  }
 0x783   :  { %v1140_v15 = vshll.u32 %v1139_v13, 16  ;;  %s1204_s29 = sshll.u32 %s1329_s28, 4  ;;  %s1205_s29 = int_to_ptr.vmem [resolvable:$true] %s1204_s29 }
 0x784   :  { %s1294_s30 = scalar_lea.vmem %s1205_s29, 16  ;;  %s1298_s4 = scalar_lea.vmem %s1205_s29, 32 }
 0x785   :  { %p1295_p1 = scmp.ne.s32.totalorder %s1205_s29, %s1294_s30  ;;  %p1299_p2 = scmp.lt.s32.totalorder %s1205_s29, %s1205_s29 }
 0x786   :  { %p1300_p3 = scmp.lt.s32.totalorder %s1298_s4, %s1294_s30 }
 0x788   :  { %p1301_p4 = por %p1300_p3, %p1299_p2 }
 0x78a   :  { %p1302_p5 = pnand %p1301_p4, %p1295_p1 }
 0x7ea   :  { %v1137_v14 = vpop.xlane.xlu1 %1136 }
 0x7eb   :  { %v1138_v16 = vcvt.f32.s32 %v1137_v14 }
 0x7ed   :  { %v1141_v17 = vadd.s32 %v1140_v15, %v1138_v16 }
 0x7ef   :  { %v1173_v18 = vsel %vm1171_vm0, %v1141_v17, %v1170_v1 }
 0x7f0   :  { %1187 = vst [vmem:[#allocation9] sm:$0x1] %v1173_v18 }
 0x7f1   :  { %1305 = shalt.err (!%p1302_p5)
}
 0x7f2   :  { %1207 = dma.vmem_to_hbm [thread:$0]  %s1205_s29, 16, %s1503_s3, [#allocation10]  }
 0x7f3   :  { %1318 = dma.done.wait [#allocation5], 16  }
 0x7f4   :  { %1319 = vsyncadd [#allocation5], 4294967280 }
 0x7f5   :  { %1320 = dma.done.wait [#allocation10], 16  }
 0x7f6   :  { %1321 = vsyncadd [#allocation10], 4294967280 }
 0x7f7   :  { %1214 = vsyncpa [#allocation4], 1 }
 0x7f8   :  { %1215 = vsyncpa [#allocation7], 1 }
 0x7f9   :  { %1216 = vsyncpa [#allocation5], 1 }
 0x7fa   :  { %1217 = vsyncpa [#allocation10], 1 }

</bundles_post_ra>
